<compile_context>
chip_gen: v7x
topology: tpu7x:2x2x1
jax: 0.10.0
libtpu: 0.0.40
codegen_flags: <defaults>
</compile_context>

<pallas_src>
import functools

import jax
import jax.numpy as jnp
from jax.experimental import pallas as pl
from jax.experimental.pallas import tpu as pltpu

LEAKY_RELU_SLOPE = 0.2


def _leaky_relu(y):
    return jnp.where(y >= 0.0, y, LEAKY_RELU_SLOPE * y)


# ----------------------------------------------------------------------------
# In-kernel Gaussian noise (TPU hardware PRNG).
# ----------------------------------------------------------------------------
def _bits_to_uniform(shape):
    """Uniform [0,1) block from raw PRNG bits (mantissa trick, ~4 VPU ops)."""
    bits = pltpu.bitcast(pltpu.prng_random_bits(shape), jnp.uint32)
    fbits = (bits >> jnp.uint32(9)) | jnp.uint32(0x3F800000)
    return pltpu.bitcast(fbits, jnp.float32) - jnp.float32(1.0)


def _normal_block(shape):
    """Standard-normal block from the (already seeded) TPU hardware PRNG."""
    if hasattr(pltpu, "stateful_normal"):
        return pltpu.stateful_normal(shape, jnp.float32)
    # Cheap Irwin-Hall fallback: sum of 4 uniforms, mean 2, var 1/3.
    # This is injected noise, not a statistical-grade sampler.
    s = _bits_to_uniform(shape)
    for _ in range(3):
        s = s + _bits_to_uniform(shape)
    return (s - jnp.float32(2.0)) * jnp.float32(1.7320508075688772)  # sqrt(3)


# ----------------------------------------------------------------------------
# Kernels
# ----------------------------------------------------------------------------
def adain_kernel_tpu(seed_ref, x_ref, w_ref, o_ref):
    # seed_ref : (1,)      int32 scalar-prefetch (SMEM)
    # x_ref    : (bc, bt)  VMEM block of x (rows = flattened batch*channel)
    # w_ref    : (bc, 1)   VMEM block of per-row weight (f32, lane-broadcast)
    # o_ref    : (bc, bt)  VMEM block of output
    i = pl.program_id(0)
    j = pl.program_id(1)
    block_id = i * pl.num_programs(1) + j
    # Single combined scalar seed: unique per (seed, block) and independent of
    # the execution order of the two "parallel" grid axes / core assignment.
    pltpu.prng_seed(seed_ref[0] * jnp.int32(1000003) + block_id)

    x = x_ref[...].astype(jnp.float32)
    w = w_ref[...]                                    # (bc, 1) f32
    noise = _normal_block(x.shape)
    y = x + noise * w
    o_ref[...] = _leaky_relu(y).astype(o_ref.dtype)


def adain_kernel_noise(x_ref, n_ref, w_ref, o_ref):
    # Portable (interpret / CPU) variant: noise is streamed in as an input.
    x = x_ref[...].astype(jnp.float32)
    n = n_ref[...].astype(jnp.float32)
    w = w_ref[...]                                    # (bc, 1) f32
    y = x + n * w
    o_ref[...] = _leaky_relu(y).astype(o_ref.dtype)


# ----------------------------------------------------------------------------
# Wrapper
# ----------------------------------------------------------------------------
@functools.partial(jax.jit, static_argnames=("block_c", "block_t"))
def adain_forward(x, weight, seed, *, block_c=256, block_t=4096):
    """AdaIN forward.

    x      : (B, C, T) array (NCT layout, as in the PyTorch module).
             f32 or bf16; bf16 halves HBM traffic on this mem-bound kernel.
    weight : (C,) per-channel noise scale (torch.ones(channels) at init).
             Kept in f32 inside the kernel regardless of x.dtype.
    seed   : int32 PRNG seed for the injected Gaussian noise.
    """
    B, C, T = x.shape
    R = B * C
    # Fold batch into the channel axis: free contiguous reshape, fewer and
    # fuller blocks, full sublane fill when C is small.
    x2 = x.reshape(R, T)
    w2 = jnp.tile(weight.astype(jnp.float32), (B,)).reshape(R, 1)

    # Lane-dense tiling: either the full dim (always legal) or a (8,128)-
    # aligned tile; ragged final blocks are masked by Pallas, so there is no
    # wrapper-side pad/slice HBM round-trip.
    bc = R if R <= block_c else block_c               # block_c multiple of 8
    bt = T if T <= block_t else block_t               # block_t multiple of 128
    grid = (pl.cdiv(R, bc), pl.cdiv(T, bt))

    compiler_params = pltpu.CompilerParams(
        # Pure elementwise: both axes parallel so v7x's two TensorCores share.
        dimension_semantics=("parallel", "parallel"),
        # 4 MiB f32 tiles, double-buffered x + out ~= 16 MiB: raise the scoped
        # VMEM limit past v5e's 16 MiB default; 32 MiB is safe on v7x (64 MiB).
        vmem_limit_bytes=32 * 1024 * 1024,
    )
    out_shape = jax.ShapeDtypeStruct((R, T), x.dtype)

    if jax.default_backend() == "tpu":
        # Noise from the in-kernel hardware PRNG: HBM traffic = read x + write y.
        seed_arr = jnp.asarray(seed, dtype=jnp.int32).reshape(1)
        out2 = pl.pallas_call(
            adain_kernel_tpu,
            out_shape=out_shape,
            grid_spec=pltpu.PrefetchScalarGridSpec(
                num_scalar_prefetch=1,
                grid=grid,
                in_specs=[
                    pl.BlockSpec((bc, bt), lambda i, j, sref: (i, j)),
                    # Weight block index depends only on the row axis, so the
                    # tiny (bc, 1) tile stays resident across the inner T loop.
                    pl.BlockSpec((bc, 1), lambda i, j, sref: (i, 0)),
                ],
                out_specs=pl.BlockSpec((bc, bt), lambda i, j, sref: (i, j)),
            ),
            compiler_params=compiler_params,
        )(seed_arr, x2, w2)
    else:
        # CPU / interpret backends have no lowering for the TPU PRNG
        # primitives, so draw the noise in the wrapper and stream it in.
        noise = jax.random.normal(jax.random.PRNGKey(seed), (R, T), jnp.float32)
        out2 = pl.pallas_call(
            adain_kernel_noise,
            out_shape=out_shape,
            grid_spec=pltpu.PrefetchScalarGridSpec(
                num_scalar_prefetch=0,
                grid=grid,
                in_specs=[
                    pl.BlockSpec((bc, bt), lambda i, j: (i, j)),
                    pl.BlockSpec((bc, bt), lambda i, j: (i, j)),
                    pl.BlockSpec((bc, 1), lambda i, j: (i, 0)),
                ],
                out_specs=pl.BlockSpec((bc, bt), lambda i, j: (i, j)),
            ),
            compiler_params=compiler_params,
        )(x2, noise, w2)

    return out2.reshape(B, C, T)


if __name__ == "__main__":
    B, C, T = 2, 4, 16

    key = jax.random.PRNGKey(0)
    x = jax.random.normal(key, (B, C, T), dtype=jnp.float32)
    # Module __init__: self.weight = nn.Parameter(torch.ones(channels))
    weight = jnp.ones((C,), dtype=jnp.float32)

    out = jax.block_until_ready(adain_forward(x, weight, 0))
    assert out.shape == (B, C, T)
    assert bool(jnp.all(jnp.isfinite(out)))

    # 1) Determinism: same seed -> identical output; different seed -> different.
    out_same = jax.block_until_ready(adain_forward(x, weight, 0))
    assert jnp.array_equal(out, out_same)
    out_other = jax.block_until_ready(adain_forward(x, weight, 1))
    assert not jnp.array_equal(out, out_other)

    # 2) Deterministic path: weight == 0 disables the noise -> plain LeakyReLU.
    out_w0 = adain_forward(x, jnp.zeros((C,), jnp.float32), 0)
    ref_w0 = jnp.where(x >= 0, x, LEAKY_RELU_SLOPE * x)
    assert jnp.allclose(out_w0, ref_w0, atol=1e-6, rtol=1e-6)

    # 3) Statistical check of the injected noise (weight == 1): leaky-relu is
    #    monotonic/invertible, so recover the noise and check mean/std ~ N(0,1).
    Bs, Cs, Ts = 2, 8, 2048
    xs = jax.random.normal(jax.random.PRNGKey(1), (Bs, Cs, Ts), jnp.float32)
    ys = jax.block_until_ready(adain_forward(xs, jnp.ones((Cs,), jnp.float32), 1234))
    pre = jnp.where(ys >= 0, ys, ys / LEAKY_RELU_SLOPE)
    noise = pre - xs
    mean = float(jnp.mean(noise))
    std = float(jnp.std(noise))
    assert abs(mean) < 0.08, f"noise mean off: {mean}"
    assert abs(std - 1.0) < 0.08, f"noise std off: {std}"

    print("KERNEL_OK")
</pallas_src>

<mosaic_0001>
module attributes {stable_mosaic.version = 11 : i64} {
  func.func @adain_kernel_noise(%arg0: i32, %arg1: i32, %arg2: memref<8x16xf32, #tpu.memory_space<vmem>>, %arg3: memref<8x16xf32, #tpu.memory_space<vmem>>, %arg4: memref<8x1xf32, #tpu.memory_space<vmem>>, %arg5: memref<8x16xf32, #tpu.memory_space<vmem>>) attributes {dimension_semantics = [#tpu.dimension_semantics<parallel>, #tpu.dimension_semantics<parallel>], iteration_bounds = array<i64: 1, 1>, scalar_prefetch = 0 : i64, scratch_operands = 0 : i64, tpu.core_type = #tpu.core_type<tc>, window_params = [{transform_indices = @transform_0, window_bounds = array<i64: 8, 16>}, {transform_indices = @transform_1, window_bounds = array<i64: 8, 16>}, {transform_indices = @transform_2, window_bounds = array<i64: 8, 1>}, {transform_indices = @transform_3, window_bounds = array<i64: 8, 16>}]} {
    %c0 = arith.constant 0 : index
    %c0_0 = arith.constant 0 : index
    %0 = vector.load %arg2[%c0, %c0_0] : memref<8x16xf32, #tpu.memory_space<vmem>>, vector<8x16xf32>
    %c0_1 = arith.constant 0 : index
    %c0_2 = arith.constant 0 : index
    %1 = vector.load %arg3[%c0_1, %c0_2] : memref<8x16xf32, #tpu.memory_space<vmem>>, vector<8x16xf32>
    %c0_3 = arith.constant 0 : index
    %c0_4 = arith.constant 0 : index
    %2 = vector.load %arg4[%c0_3, %c0_4] : memref<8x1xf32, #tpu.memory_space<vmem>>, vector<8x1xf32>
    %3 = vector.broadcast %2 : vector<8x1xf32> to vector<8x16xf32>
    %4 = arith.mulf %1, %3 : vector<8x16xf32>
    %5 = arith.addf %0, %4 : vector<8x16xf32>
    %cst = arith.constant 0.000000e+00 : f32
    %6 = vector.broadcast %cst : f32 to vector<8x16xf32>
    %7 = arith.cmpf oge, %5, %6 : vector<8x16xf32>
    %cst_5 = arith.constant 2.000000e-01 : f32
    %8 = vector.broadcast %cst_5 : f32 to vector<8x16xf32>
    %9 = arith.mulf %8, %5 : vector<8x16xf32>
    %10 = arith.select %7, %5, %9 : vector<8x16xi1>, vector<8x16xf32>
    %c0_6 = arith.constant 0 : index
    %c0_7 = arith.constant 0 : index
    %11 = vector.load %arg5[%c0_6, %c0_7] : memref<8x16xf32, #tpu.memory_space<vmem>>, vector<8x16xf32>
    tpu.vector_store %arg5[%c0_6, %c0_7], %10 {strides = array<i32>} : memref<8x16xf32, #tpu.memory_space<vmem>>, vector<8x16xf32>,
    return
  }
  func.func @transform_0(%arg0: i32, %arg1: i32) -> (i32, i32) {
    %c0_i32 = arith.constant 0 : i32
    return %arg0, %arg1 : i32, i32
  }
  func.func @transform_1(%arg0: i32, %arg1: i32) -> (i32, i32) {
    %c0_i32 = arith.constant 0 : i32
    return %arg0, %arg1 : i32, i32
  }
  func.func @transform_2(%arg0: i32, %arg1: i32) -> (i32, i32) {
    %c0_i32 = arith.constant 0 : i32
    %c0_i32_0 = arith.constant 0 : i32
    return %arg0, %c0_i32 : i32, i32
  }
  func.func @transform_3(%arg0: i32, %arg1: i32) -> (i32, i32) {
    %c0_i32 = arith.constant 0 : i32
    return %arg0, %arg1 : i32, i32
  }
}

</mosaic_0001>

<bundles_post_ra>
// kernel: tile.8
= control target key start
LH: loop header
LB: loop body
LE: loop exit
PB: predicated region body
PF: predicated region fallthrough
CT: control target
= control target key end

     0   :  { %s22_s0 = inlined_call_operand.vmem [shape: f32[4], index: 0, kind: input, shape index: {}]   ;;  %s23_s1 = inlined_call_operand.vmem [shape: f32[2,4], index: 1, kind: output, shape index: {}]  }
   0x1   :  { %v4_v0 = vld [vmem:[%s22_s0] ss:$0 sm:$0xff] }
   0x2   :  { %5 = vst [vmem:[%s23_s1] sm:$0x3] %v4_v0 }

// kernel: tile.0
= control target key start
LH: loop header
LB: loop body
LE: loop exit
PB: predicated region body
PF: predicated region fallthrough
CT: control target
= control target key end

     0   :  { %s34_s8 = smov 125   ;;  %vm7_vm0 = vcmask 7168   ;;  %s35_s11 = smov 126   ;;  %s61_s0 = inlined_call_operand.vmem [shape: f32[2,4], index: 0, kind: input, shape index: {}]   ;;  %s62_s1 = inlined_call_operand.vmem [shape: f32[8,1], index: 1, kind: output, shape index: {}]  }
   0x1   :  { %v4_v0 = vld [vmem:[%s61_s0] sm:$0x3]  ;;  %s33_s0 = smov 127  }
   0x2   :  { %5 = vst [vmem:[#allocation0] sm:$0x3] %v4_v0 }
   0x9   :  { %v9_v1 = vld [vmem:[#allocation0] sm:$0x3]  }
   0xa   :  { %v21_v2 = vld [vmem:[#allocation0] sm:$0x3]   ;;  %10 = vrot.lane.b32.xlu0 %v9_v1, %s33_s0 }
   0xb   :  { %22 = vrot.lane.b32.xlu1 %v21_v2, %s34_s8  ;;  %v6_v3 = vld [vmem:[#allocation0] sm:$0x3]  }
   0xc   :  { %v15_v4 = vld [vmem:[#allocation0] sm:$0x3]   ;;  %8 = vst.msk [vmem:[%s62_s1] ss:$4 sm:$0x3] %vm7_vm0, %v6_v3  }
   0xe   :  { %16 = vrot.lane.b32.xlu0 %v15_v4, %s35_s11 }
  0x7c   :  { %v11_v5 = vpop.permute.xlu0 %10  }
  0x7d   :  { %v23_v6 = vpop.permute.xlu1 %22   ;;  %27 = vst.msk [vmem:[%s62_s1 + $0x1] ss:$4 sm:$0x3] %vm7_vm0, %v11_v5  }
  0x7e   :  { %29 = vst.msk [vmem:[%s62_s1 + $0x3] ss:$4 sm:$0x3] %vm7_vm0, %v23_v6  }
  0x80   :  { %v17_v7 = vpop.permute.xlu0 %16  }
  0x81   :  { %28 = vst.msk [vmem:[%s62_s1 + $0x2] ss:$4 sm:$0x3] %vm7_vm0, %v17_v7  }

// kernel: adain_forward.1
= control target key start
LH: loop header
LB: loop body
LE: loop exit
PB: predicated region body
PF: predicated region fallthrough
CT: control target
= control target key end

     0   :  { %s114_s0 = inlined_call_operand.vmem [shape: f32[8,16], index: 0, kind: input, shape index: {}]   ;;  %s115_s1 = inlined_call_operand.vmem [shape: f32[8,16], index: 1, kind: input, shape index: {}]   ;;  %s116_s2 = inlined_call_operand.vmem [shape: f32[8,1], index: 2, kind: input, shape index: {}]   ;;  %s117_s3 = inlined_call_operand.hbm [shape: f32[8,16], index: 3, kind: output, shape index: {}]  }
   0x1   :  { %v17_v0 = vld [vmem:[%s116_s2] sm:$0xff] }
   0x2   :  { %8 = vsyncpa [#allocation3], 0  ;;  %v71_v1 = vmov 0   ;;  %v16_v2 = vld [vmem:[%s115_s1] sm:$0xff]  ;;  %s72_s18 = smov [#allocation2]   ;;  %vm28_vm1 = vcmask 130048  }
   0x3   :  { %46 = vset.pattern.permute.xlu0 %v71_v1  ;;  %v15_v4 = vld [vmem:[%s114_s0] sm:$0xff]  ;;  %s36_s19 = sshll.u32 %s72_s18, 4  ;;  %s37_s19 = int_to_ptr.vmem [resolvable:$true] %s36_s19 }
   0x4   :  { %20 = vperm.xlu0 %46, %v17_v0   ;;  %s47_s2 = scalar_lea.vmem %s37_s19, 128  ;;  %p52_p1 = scmp.lt.s32.totalorder %s37_s19, %s37_s19 }
   0x5   :  { %p48_p0 = scmp.ne.s32.totalorder %s37_s19, %s47_s2  ;;  %p53_p2 = scmp.lt.s32.totalorder %s47_s2, %s47_s2 }
   0x7   :  { %p54_p3 = por %p53_p2, %p52_p1 }
   0x9   :  { %p55_p4 = pnand %p54_p3, %p48_p0 }
  0x83   :  { %v21_v3 = vpop.permute.xlu0 %20 }
  0x84   :  { %v23_v5 = vmul.f32 %v21_v3, %v16_v2 }
  0x86   :  { %v24_v6 = vadd.f32 %v23_v5, %v15_v4 }
  0x88   :  { %v26_v7 = vmul.f32 0.2, %v24_v6  ;;  %vm25_vm0 = vcmp.ge.f32.partialorder %v24_v6, 0.0 }
  0x8a   :  { %v27_v8 = vsel %vm25_vm0, %v24_v6, %v26_v7 }
  0x8b   :  { %29 = vst.msk [vmem:[#allocation2] sm:$0xff] %vm28_vm1, %v27_v8 }
  0x8c   :  { %58 = shalt.err (!%p55_p4)
}
  0x8d   :  { %s59_s0 = scalar_lea.hbm %s117_s3, 128 }
  0x8e   :  { %p60_p5 = scmp.ne.s32.totalorder %s117_s3, %s59_s0  ;;  %p63_p6 = scmp.lt.u32.totalorder %s59_s0, %s117_s3 }
  0x90   :  { %p65_p7 = pnand %p63_p6, %p60_p5 }
  0x92   :  { %68 = shalt.err (!%p65_p7)
}
  0x93   :  { %39 = dma.vmem_to_hbm [thread:$0]  %s37_s19, 128, %s117_s3, [#allocation3]  }
  0x94   :  { %69 = dma.done.wait [#allocation3], 128  }
  0x95   :  { %70 = vsyncadd [#allocation3], 4294967168 }
  0x96   :  { %43 = vsyncpa [#allocation3], 1 }

</bundles_post_ra>
